<compile_context>
chip_gen: v5e
topology: v5e:2x2
jax: 0.10.0
libtpu: 0.0.40
codegen_flags: <defaults>
</compile_context>

<pallas_src>
import jax
import jax.numpy as jnp
from jax.experimental import pallas as pl
from jax.experimental.pallas import tpu as pltpu

KSIZE = 3                  # conv kernel size, stride 1, valid padding
HALO = 2 * (KSIZE - 1)     # 4 rows consumed by the two stacked convs


def _round_up(x, m):
    return (x + m - 1) // m * m


def _banded(taps, n_in, n_out):
    """(n_in, n_out) matrix M with M[f+dj, f] = taps[dj]; x @ M == valid 1-D conv."""
    g = jnp.arange(n_in)[:, None]
    f = jnp.arange(n_out)[None, :]
    d = g - f
    valid = (d >= 0) & (d < KSIZE)
    return jnp.where(valid, taps[jnp.clip(d, 0, KSIZE - 1)], 0.0).astype(jnp.float32)


def _subsample_kernel(x_ref, w1b_ref, b1_ref, w2b_ref, b2_ref, wl_ref, bl_ref, o_ref):
    # x_ref : (1, 1, L, F)   L = Bblk * Tin rows (Bblk planes stacked on sublanes)
    # w1b   : (3, F, F-2), w2b: (3, F-2, F-4)  banded conv matrices (VMEM, resident)
    # b1/b2 : (1,) scalars in SMEM
    # wl    : (F-4, OutP), bl: (1, OutP)       lane-padded linear layer (VMEM)
    # o_ref : (1, 1, L, OutP)
    rows, feat = x_ref.shape[2], x_ref.shape[3]
    out_p = o_ref.shape[3]

    x = x_ref[...].reshape(rows, feat).astype(jnp.float32)
    w1b = w1b_ref[...]
    w2b = w2b_ref[...]

    # ---- conv1 + ReLU: feature taps on the MXU (banded matmul), time taps as
    #      3 cheap sublane-shifted slices; accumulator init'd with first tap.
    r1 = rows - (KSIZE - 1)
    h1 = jnp.dot(x[0:r1], w1b[0], preferred_element_type=jnp.float32)
    h1 = h1 + jnp.dot(x[1:r1 + 1], w1b[1], preferred_element_type=jnp.float32)
    h1 = h1 + jnp.dot(x[2:r1 + 2], w1b[2], preferred_element_type=jnp.float32)
    h1 = jnp.maximum(h1 + b1_ref[0], 0.0)                     # (L-2, F-2)

    # ---- conv2 + ReLU
    r2 = rows - HALO
    h2 = jnp.dot(h1[0:r2], w2b[0], preferred_element_type=jnp.float32)
    h2 = h2 + jnp.dot(h1[1:r2 + 1], w2b[1], preferred_element_type=jnp.float32)
    h2 = h2 + jnp.dot(h1[2:r2 + 2], w2b[2], preferred_element_type=jnp.float32)
    h2 = jnp.maximum(h2 + b2_ref[0], 0.0)                     # (L-4, F-4)

    # ---- linear over features; M = L-4 rows keeps the MXU occupied.
    y = jnp.dot(h2, wl_ref[...], preferred_element_type=jnp.float32) + bl_ref[...]

    # Pad back to L rows (tail is cropped by the wrapper) so the store is one
    # full, lane-dense block.
    tail = jnp.zeros((HALO, out_p), jnp.float32)
    y_full = jnp.concatenate([y, tail], axis=0)               # (L, OutP)
    o_ref[...] = y_full.reshape(1, 1, rows, out_p).astype(o_ref.dtype)


def naive_conv2d_subsampling(x, w1, b1, w2, b2, wl, bl,
                             *, time_tile=256, batch_block=8):
    """x: (B, T, F) float32. Returns (B, T-4, out_size) float32."""
    B, T, F = x.shape
    assert T > HALO, "need T > 4"
    F1, F2 = F - (KSIZE - 1), F - HALO
    out_size = wl.shape[1]

    # --- lane-dense output: pad out_size to a multiple of 128 ----------------
    out_p = _round_up(out_size, 128)
    wl_p = jnp.pad(wl.astype(jnp.float32), ((0, 0), (0, out_p - out_size)))
    bl_p = jnp.pad(bl.reshape(1, -1).astype(jnp.float32),
                   ((0, 0), (0, out_p - out_size)))

    # --- banded conv matrices (built once, host side) ------------------------
    w1b = jnp.stack([_banded(w1[di], F, F1) for di in range(KSIZE)])   # (3,F,F1)
    w2b = jnp.stack([_banded(w2[di], F1, F2) for di in range(KSIZE)])  # (3,F1,F2)

    # --- tiling: t_tile output rows per tile (multiple of 8), 8-row halo so the
    #     input window stays sublane-aligned; b_blk planes fused per grid step.
    t_out_total = T - HALO
    t_tile = min(time_tile, _round_up(t_out_total, 8))
    t_in = t_tile + 8                      # 4 halo rows needed + 4 for alignment
    n_t = pl.cdiv(t_out_total, t_tile)
    b_blk = min(B, batch_block)
    n_b = pl.cdiv(B, b_blk)

    t_need = (n_t - 1) * t_tile + t_in
    x_p = jnp.pad(x.astype(jnp.float32),
                  ((0, n_b * b_blk - B), (0, t_need - T), (0, 0)))
    x_p = x_p.reshape(n_b, b_blk, t_need, F)
    # overlapped (halo) time tiles; planes flattened onto the sublane axis
    slabs = [x_p[:, :, j * t_tile:j * t_tile + t_in, :]
             .reshape(n_b, b_blk * t_in, F) for j in range(n_t)]
    x_tiles = jnp.stack(slabs, axis=1)          # (n_b, n_t, b_blk*t_in, F)
    rows = b_blk * t_in

    b1 = b1.reshape(1).astype(jnp.float32)
    b2 = b2.reshape(1).astype(jnp.float32)

    y_tiles = pl.pallas_call(
        _subsample_kernel,
        out_shape=jax.ShapeDtypeStruct((n_b, n_t, rows, out_p), jnp.float32),
        grid_spec=pltpu.PrefetchScalarGridSpec(
            num_scalar_prefetch=0,
            grid=(n_b, n_t),
            in_specs=[
                pl.BlockSpec((1, 1, rows, F), lambda bi, j: (bi, j, 0, 0)),
                pl.BlockSpec((KSIZE, F, F1), lambda bi, j: (0, 0, 0)),   # resident
                pl.BlockSpec(memory_space=pltpu.MemorySpace.SMEM),       # b1
                pl.BlockSpec((KSIZE, F1, F2), lambda bi, j: (0, 0, 0)),  # resident
                pl.BlockSpec(memory_space=pltpu.MemorySpace.SMEM),       # b2
                pl.BlockSpec((F2, out_p), lambda bi, j: (0, 0)),         # resident
                pl.BlockSpec((1, out_p), lambda bi, j: (0, 0)),          # resident
            ],
            out_specs=pl.BlockSpec((1, 1, rows, out_p),
                                   lambda bi, j: (bi, j, 0, 0)),
        ),
        compiler_params=pltpu.CompilerParams(
            dimension_semantics=("parallel", "parallel"),
            vmem_limit_bytes=32 * 1024 * 1024,
        ),
    )(x_tiles, w1b, b1, w2b, b2, wl_p, bl_p)

    # crop per-plane garbage/halo rows, undo the tiling, strip padding
    y = y_tiles.reshape(n_b, n_t, b_blk, t_in, out_p)[:, :, :, :t_tile, :]
    y = y.transpose(0, 2, 1, 3, 4).reshape(n_b * b_blk, n_t * t_tile, out_p)
    return y[:B, :t_out_total, :out_size]


def _reference(x, w1, b1, w2, b2, wl, bl):
    """Pure-JAX reference with the same semantics (shift-and-add valid conv)."""
    def conv3x3(img, w, b):  # img: (B, H, W)
        Bc, H, W = img.shape
        out = jnp.zeros((Bc, H - 2, W - 2), jnp.float32)
        for di in range(KSIZE):
            for dj in range(KSIZE):
                out = out + w[di, dj] * img[:, di:di + H - 2, dj:dj + W - 2]
        return jnp.maximum(out + b[0], 0.0)
    h = conv3x3(x, w1, b1)
    h = conv3x3(h, w2, b2)
    return h @ wl + bl[0]


if __name__ == "__main__":
    # Small shapes consistent with the module: in_size=16 -> conv_out_size=12.
    B, T, in_size, out_size = 2, 8, 16, 32
    conv_out_size = in_size - HALO   # 12

    key = jax.random.PRNGKey(0)
    kx, k1, k2, k3, k4, k5, k6 = jax.random.split(key, 7)

    x = jax.random.normal(kx, (B, T, in_size), dtype=jnp.float32)

    # Deterministic synthetic parameters (shapes match nn.Conv2d(1,1,3) / nn.Linear).
    w_conv1 = 0.1 * jax.random.normal(k1, (KSIZE, KSIZE), dtype=jnp.float32)
    b_conv1 = 0.1 * jax.random.normal(k2, (1,), dtype=jnp.float32)
    w_conv2 = 0.1 * jax.random.normal(k3, (KSIZE, KSIZE), dtype=jnp.float32)
    b_conv2 = 0.1 * jax.random.normal(k4, (1,), dtype=jnp.float32)
    # Linear: stored as (in_features, out_features) = transpose of PyTorch's (out, in).
    w_lin = 0.1 * jax.random.normal(k5, (conv_out_size, out_size), dtype=jnp.float32)
    b_lin = 0.1 * jax.random.normal(k6, (1, out_size), dtype=jnp.float32)

    y = naive_conv2d_subsampling(x, w_conv1, b_conv1, w_conv2, b_conv2, w_lin, b_lin)
    y = jax.block_until_ready(y)

    y_ref = _reference(x, w_conv1, b_conv1, w_conv2, b_conv2, w_lin, b_lin)
    assert y.shape == (B, T - 4, out_size), y.shape
    max_err = float(jnp.max(jnp.abs(y - y_ref)))
    assert jnp.allclose(y, y_ref, atol=1e-4, rtol=1e-4), f"mismatch, max_err={max_err}"

    print("KERNEL_OK")
</pallas_src>

<mosaic_0001>
module attributes {stable_mosaic.version = 11 : i64} {
  func.func @_subsample_kernel(%arg0: i32, %arg1: i32, %arg2: memref<1x1x32x16xf32, #tpu.memory_space<vmem>>, %arg3: memref<3x16x14xf32, #tpu.memory_space<vmem>>, %arg4: memref<1xf32, #tpu.memory_space<smem>>, %arg5: memref<3x14x12xf32, #tpu.memory_space<vmem>>, %arg6: memref<1xf32, #tpu.memory_space<smem>>, %arg7: memref<12x128xf32, #tpu.memory_space<vmem>>, %arg8: memref<1x128xf32, #tpu.memory_space<vmem>>, %arg9: memref<1x1x32x128xf32, #tpu.memory_space<vmem>>) attributes {dimension_semantics = [#tpu.dimension_semantics<parallel>, #tpu.dimension_semantics<parallel>], iteration_bounds = array<i64: 1, 1>, scalar_prefetch = 0 : i64, scratch_operands = 0 : i64, tpu.core_type = #tpu.core_type<tc>, window_params = [{transform_indices = @transform_0, window_bounds = array<i64: 1, 1, 32, 16>}, {pipeline_mode = #tpu.pipeline_mode<synchronous>, transform_indices = @transform_1, window_bounds = array<i64: 3, 16, 14>}, {transform_indices = @transform_2, window_bounds = array<i64: 1>}, {pipeline_mode = #tpu.pipeline_mode<synchronous>, transform_indices = @transform_3, window_bounds = array<i64: 3, 14, 12>}, {transform_indices = @transform_4, window_bounds = array<i64: 1>}, {pipeline_mode = #tpu.pipeline_mode<synchronous>, transform_indices = @transform_5, window_bounds = array<i64: 12, 128>}, {pipeline_mode = #tpu.pipeline_mode<synchronous>, transform_indices = @transform_6, window_bounds = array<i64: 1, 128>}, {transform_indices = @transform_7, window_bounds = array<i64: 1, 1, 32, 128>}]} {
    %c0 = arith.constant 0 : index
    %c0_0 = arith.constant 0 : index
    %c0_1 = arith.constant 0 : index
    %c0_2 = arith.constant 0 : index
    %0 = vector.load %arg2[%c0, %c0_0, %c0_1, %c0_2] : memref<1x1x32x16xf32, #tpu.memory_space<vmem>>, vector<1x1x32x16xf32>
    %1 = vector.shape_cast %0 : vector<1x1x32x16xf32> to vector<32x16xf32>
    %c0_3 = arith.constant 0 : index
    %c0_4 = arith.constant 0 : index
    %c0_5 = arith.constant 0 : index
    %2 = vector.load %arg3[%c0_3, %c0_4, %c0_5] : memref<3x16x14xf32, #tpu.memory_space<vmem>>, vector<3x16x14xf32>
    %c0_6 = arith.constant 0 : index
    %c0_7 = arith.constant 0 : index
    %c0_8 = arith.constant 0 : index
    %3 = vector.load %arg5[%c0_6, %c0_7, %c0_8] : memref<3x14x12xf32, #tpu.memory_space<vmem>>, vector<3x14x12xf32>
    %4 = vector.extract_strided_slice %1 {offsets = [0, 0], sizes = [30, 16], strides = [1, 1]} : vector<32x16xf32> to vector<30x16xf32>
    %5 = vector.extract_strided_slice %2 {offsets = [0, 0, 0], sizes = [1, 16, 14], strides = [1, 1, 1]} : vector<3x16x14xf32> to vector<1x16x14xf32>
    %6 = vector.shape_cast %5 : vector<1x16x14xf32> to vector<16x14xf32>
    %cst = arith.constant dense<0.000000e+00> : vector<30x14xf32>
    %7 = tpu.matmul %4, %6, %cst {dimension_numbers = #tpu.dot_dimension_numbers<[1], [0], [0], [1], [0, 0, 1, 1], [], []>} : vector<30x16xf32>, vector<16x14xf32>, vector<30x14xf32> -> vector<30x14xf32>
    %8 = vector.extract_strided_slice %1 {offsets = [1, 0], sizes = [30, 16], strides = [1, 1]} : vector<32x16xf32> to vector<30x16xf32>
    %9 = vector.extract_strided_slice %2 {offsets = [1, 0, 0], sizes = [1, 16, 14], strides = [1, 1, 1]} : vector<3x16x14xf32> to vector<1x16x14xf32>
    %10 = vector.shape_cast %9 : vector<1x16x14xf32> to vector<16x14xf32>
    %cst_9 = arith.constant dense<0.000000e+00> : vector<30x14xf32>
    %11 = tpu.matmul %8, %10, %cst_9 {dimension_numbers = #tpu.dot_dimension_numbers<[1], [0], [0], [1], [0, 0, 1, 1], [], []>} : vector<30x16xf32>, vector<16x14xf32>, vector<30x14xf32> -> vector<30x14xf32>
    %12 = arith.addf %7, %11 : vector<30x14xf32>
    %13 = vector.extract_strided_slice %1 {offsets = [2, 0], sizes = [30, 16], strides = [1, 1]} : vector<32x16xf32> to vector<30x16xf32>
    %14 = vector.extract_strided_slice %2 {offsets = [2, 0, 0], sizes = [1, 16, 14], strides = [1, 1, 1]} : vector<3x16x14xf32> to vector<1x16x14xf32>
    %15 = vector.shape_cast %14 : vector<1x16x14xf32> to vector<16x14xf32>
    %cst_10 = arith.constant dense<0.000000e+00> : vector<30x14xf32>
    %16 = tpu.matmul %13, %15, %cst_10 {dimension_numbers = #tpu.dot_dimension_numbers<[1], [0], [0], [1], [0, 0, 1, 1], [], []>} : vector<30x16xf32>, vector<16x14xf32>, vector<30x14xf32> -> vector<30x14xf32>
    %17 = arith.addf %12, %16 : vector<30x14xf32>
    %c0_11 = arith.constant 0 : index
    %18 = memref.load %arg4[%c0_11] : memref<1xf32, #tpu.memory_space<smem>>
    %19 = vector.broadcast %18 : f32 to vector<30x14xf32>
    %20 = arith.addf %17, %19 : vector<30x14xf32>
    %cst_12 = arith.constant 0.000000e+00 : f32
    %21 = vector.broadcast %cst_12 : f32 to vector<30x14xf32>
    %22 = arith.maximumf %20, %21 : vector<30x14xf32>
    %23 = vector.extract_strided_slice %22 {offsets = [0, 0], sizes = [28, 14], strides = [1, 1]} : vector<30x14xf32> to vector<28x14xf32>
    %24 = vector.extract_strided_slice %3 {offsets = [0, 0, 0], sizes = [1, 14, 12], strides = [1, 1, 1]} : vector<3x14x12xf32> to vector<1x14x12xf32>
    %25 = vector.shape_cast %24 : vector<1x14x12xf32> to vector<14x12xf32>
    %cst_13 = arith.constant dense<0.000000e+00> : vector<28x12xf32>
    %26 = tpu.matmul %23, %25, %cst_13 {dimension_numbers = #tpu.dot_dimension_numbers<[1], [0], [0], [1], [0, 0, 1, 1], [], []>} : vector<28x14xf32>, vector<14x12xf32>, vector<28x12xf32> -> vector<28x12xf32>
    %27 = vector.extract_strided_slice %22 {offsets = [1, 0], sizes = [28, 14], strides = [1, 1]} : vector<30x14xf32> to vector<28x14xf32>
    %28 = vector.extract_strided_slice %3 {offsets = [1, 0, 0], sizes = [1, 14, 12], strides = [1, 1, 1]} : vector<3x14x12xf32> to vector<1x14x12xf32>
    %29 = vector.shape_cast %28 : vector<1x14x12xf32> to vector<14x12xf32>
    %cst_14 = arith.constant dense<0.000000e+00> : vector<28x12xf32>
    %30 = tpu.matmul %27, %29, %cst_14 {dimension_numbers = #tpu.dot_dimension_numbers<[1], [0], [0], [1], [0, 0, 1, 1], [], []>} : vector<28x14xf32>, vector<14x12xf32>, vector<28x12xf32> -> vector<28x12xf32>
    %31 = arith.addf %26, %30 : vector<28x12xf32>
    %32 = vector.extract_strided_slice %22 {offsets = [2, 0], sizes = [28, 14], strides = [1, 1]} : vector<30x14xf32> to vector<28x14xf32>
    %33 = vector.extract_strided_slice %3 {offsets = [2, 0, 0], sizes = [1, 14, 12], strides = [1, 1, 1]} : vector<3x14x12xf32> to vector<1x14x12xf32>
    %34 = vector.shape_cast %33 : vector<1x14x12xf32> to vector<14x12xf32>
    %cst_15 = arith.constant dense<0.000000e+00> : vector<28x12xf32>
    %35 = tpu.matmul %32, %34, %cst_15 {dimension_numbers = #tpu.dot_dimension_numbers<[1], [0], [0], [1], [0, 0, 1, 1], [], []>} : vector<28x14xf32>, vector<14x12xf32>, vector<28x12xf32> -> vector<28x12xf32>
    %36 = arith.addf %31, %35 : vector<28x12xf32>
    %c0_16 = arith.constant 0 : index
    %37 = memref.load %arg6[%c0_16] : memref<1xf32, #tpu.memory_space<smem>>
    %38 = vector.broadcast %37 : f32 to vector<28x12xf32>
    %39 = arith.addf %36, %38 : vector<28x12xf32>
    %cst_17 = arith.constant 0.000000e+00 : f32
    %40 = vector.broadcast %cst_17 : f32 to vector<28x12xf32>
    %41 = arith.maximumf %39, %40 : vector<28x12xf32>
    %c0_18 = arith.constant 0 : index
    %c0_19 = arith.constant 0 : index
    %42 = vector.load %arg7[%c0_18, %c0_19] : memref<12x128xf32, #tpu.memory_space<vmem>>, vector<12x128xf32>
    %cst_20 = arith.constant dense<0.000000e+00> : vector<28x128xf32>
    %43 = tpu.matmul %41, %42, %cst_20 {dimension_numbers = #tpu.dot_dimension_numbers<[1], [0], [0], [1], [0, 0, 1, 1], [], []>} : vector<28x12xf32>, vector<12x128xf32>, vector<28x128xf32> -> vector<28x128xf32>
    %c0_21 = arith.constant 0 : index
    %c0_22 = arith.constant 0 : index
    %44 = vector.load %arg8[%c0_21, %c0_22] : memref<1x128xf32, #tpu.memory_space<vmem>>, vector<1x128xf32>
    %45 = vector.broadcast %44 : vector<1x128xf32> to vector<28x128xf32>
    %46 = arith.addf %43, %45 : vector<28x128xf32>
    %cst_23 = arith.constant 0.000000e+00 : f32
    %47 = vector.broadcast %cst_23 : f32 to vector<4x128xf32>
    %48 = tpu.concatenate %46, %47 in 0 : vector<28x128xf32>, vector<4x128xf32> -> vector<32x128xf32>
    %49 = vector.shape_cast %48 : vector<32x128xf32> to vector<1x1x32x128xf32>
    %c0_24 = arith.constant 0 : index
    %c0_25 = arith.constant 0 : index
    %c0_26 = arith.constant 0 : index
    %c0_27 = arith.constant 0 : index
    %50 = vector.load %arg9[%c0_24, %c0_25, %c0_26, %c0_27] : memref<1x1x32x128xf32, #tpu.memory_space<vmem>>, vector<1x1x32x128xf32>
    tpu.vector_store %arg9[%c0_24, %c0_25, %c0_26, %c0_27], %49 {strides = array<i32>} : memref<1x1x32x128xf32, #tpu.memory_space<vmem>>, vector<1x1x32x128xf32>,
    return
  }
  func.func @transform_0(%arg0: i32, %arg1: i32) -> (i32, i32, i32, i32) {
    %c0_i32 = arith.constant 0 : i32
    %c0_i32_0 = arith.constant 0 : i32
    %c0_i32_1 = arith.constant 0 : i32
    return %arg0, %arg1, %c0_i32, %c0_i32_0 : i32, i32, i32, i32
  }
  func.func @transform_1(%arg0: i32, %arg1: i32) -> (i32, i32, i32) {
    %c0_i32 = arith.constant 0 : i32
    %c0_i32_0 = arith.constant 0 : i32
    %c0_i32_1 = arith.constant 0 : i32
    %c0_i32_2 = arith.constant 0 : i32
    return %c0_i32, %c0_i32_0, %c0_i32_1 : i32, i32, i32
  }
  func.func @transform_2(%arg0: i32, %arg1: i32) -> i32 {
    %c0_i32 = arith.constant 0 : i32
    %c0_i32_0 = arith.constant 0 : i32
    return %c0_i32 : i32
  }
  func.func @transform_3(%arg0: i32, %arg1: i32) -> (i32, i32, i32) {
    %c0_i32 = arith.constant 0 : i32
    %c0_i32_0 = arith.constant 0 : i32
    %c0_i32_1 = arith.constant 0 : i32
    %c0_i32_2 = arith.constant 0 : i32
    return %c0_i32, %c0_i32_0, %c0_i32_1 : i32, i32, i32
  }
  func.func @transform_4(%arg0: i32, %arg1: i32) -> i32 {
    %c0_i32 = arith.constant 0 : i32
    %c0_i32_0 = arith.constant 0 : i32
    return %c0_i32 : i32
  }
  func.func @transform_5(%arg0: i32, %arg1: i32) -> (i32, i32) {
    %c0_i32 = arith.constant 0 : i32
    %c0_i32_0 = arith.constant 0 : i32
    %c0_i32_1 = arith.constant 0 : i32
    return %c0_i32, %c0_i32_0 : i32, i32
  }
  func.func @transform_6(%arg0: i32, %arg1: i32) -> (i32, i32) {
    %c0_i32 = arith.constant 0 : i32
    %c0_i32_0 = arith.constant 0 : i32
    %c0_i32_1 = arith.constant 0 : i32
    return %c0_i32, %c0_i32_0 : i32, i32
  }
  func.func @transform_7(%arg0: i32, %arg1: i32) -> (i32, i32, i32, i32) {
    %c0_i32 = arith.constant 0 : i32
    %c0_i32_0 = arith.constant 0 : i32
    %c0_i32_1 = arith.constant 0 : i32
    return %arg0, %arg1, %c0_i32, %c0_i32_0 : i32, i32, i32, i32
  }
}

</mosaic_0001>

<bundles_post_ra>
// kernel: tpu_custom_call.1
= control target key start
LH: loop header
LB: loop body
LE: loop exit
PB: predicated region body
PF: predicated region fallthrough
CT: control target
= control target key end

     0   :  { %14 = vsyncpa [#allocation5], 0  ;;  %s722_s0 = inlined_call_operand.vmem [shape: f32[1,1,32,16], index: 0, kind: input, shape index: {}]   ;;  %s723_s1 = inlined_call_operand.vmem [shape: f32[3,16,14], index: 1, kind: input, shape index: {}]   ;;  %s724_s2 = inlined_call_operand.<no memory space> [shape: f32[1], index: 2, kind: input, shape index: {}]   ;;  %s725_s3 = inlined_call_operand.hbm [shape: f32[3,14,12], index: 3, kind: input, shape index: {}]   ;;  %s726_s4 = inlined_call_operand.<no memory space> [shape: f32[1], index: 4, kind: input, shape index: {}]   ;;  %s727_s5 = inlined_call_operand.hbm [shape: f32[12,128], index: 5, kind: input, shape index: {}]   ;;  %s728_s6 = inlined_call_operand.vmem [shape: f32[1,128], index: 6, kind: input, shape index: {}]   ;;  %s729_s7 = inlined_call_operand.hbm [shape: f32[1,1,32,128], index: 7, kind: output, shape index: {}]  }
   0x1   :  { %15 = vsyncpa [#allocation8], 0 }
   0x2   :  { %16 = vsyncpa [#allocation6], 0  ;;  %s27_s26 = sshll.u32 %s725_s3, 4  ;;  %s575_s27 = smov [#allocation4]   ;;  %s28_s26 = int_to_ptr.hbm [resolvable:$true] %s27_s26 }
   0x3   :  { %s29_s28 = sshll.u32 %s575_s27, 4  ;;  %s42_s8 = sshll.u32 %s727_s5, 4  ;;  %s30_s28 = int_to_ptr.vmem [resolvable:$true] %s29_s28  ;;  %s43_s8 = int_to_ptr.hbm [resolvable:$true] %s42_s8 }
   0x4   :  { %s576_s9 = smov 128   ;;  %s577_s10 = smov 8  }
   0x5   :  { %35 = dma.hbm_to_vmem [thread:$0]  %s28_s26, 768, %s30_s28, [#allocation5], %s576_s9, %s576_s9, %s577_s10  }
   0x6   :  { %s578_s11 = smov [#allocation7]  }
   0x7   :  { %s44_s12 = sshll.u32 %s578_s11, 4  ;;  %s45_s12 = int_to_ptr.vmem [resolvable:$true] %s44_s12 }
   0x8   :  { %50 = dma.hbm_to_vmem [thread:$0]  %s43_s8, 256, %s45_s12, [#allocation8], %s576_s9, %s576_s9, %s577_s10  }
   0x9   :  { %569 = dma.done.wait [#allocation5], 768  }
   0xa   :  { %570 = vsyncadd [#allocation5], 4294966528 }
   0xb   :  { %571 = dma.done.wait [#allocation8], 256  }
   0xc   :  { %572 = vsyncadd [#allocation8], 4294967040  ;;  %v68_v0 = vld [vmem:[%s723_s1 + $0x18] sm:$0xff]  ;;  %v67_v1 = vld [vmem:[%s723_s1 + $0x10] sm:$0xff]  ;;  %vm81_vm0 = vcmask 1046528   ;;  %vm89_vm1 = vcmask 130048   ;;  %v214_v37 = vstv %s724_s2 }
   0xd   :  { %v70_v2 = vld [vmem:[%s723_s1 + $0x28] sm:$0xff]  ;;  %112 = vmatpush.msra.mxu0 %v68_v0  ;;  %485 = vmatpush.msra.mxu3 %v68_v0  ;;  %v61_v3 = vld [vmem:[%s722_s0] sm:$0xff]  ;;  %v63_v5 = vld [vmem:[%s722_s0 + $0x10] sm:$0xff]  ;;  %vm164_vm2 = vcmask 1045504   ;;  %vm395_vm3 = vcmask 1043456   ;;  %vm234_vm4 = vcmask 113664  }
   0xe   :  { %v62_v4 = vld [vmem:[%s722_s0 + $0x8] sm:$0xff]  ;;  %489 = vmatpush.msra.mxu2 %v70_v2  ;;  %v82_v6 = vrot.slane %v61_v3, 1  ;;  %v85_v8 = vrot.slane %v63_v5, 1  ;;  %v69_v9 = vld [vmem:[%s723_s1 + $0x20] sm:$0xff]  ;;  %v168_v12 = vrot.slane %v63_v5, 2  ;;  %v64_v13 = vld [vmem:[%s722_s0 + $0x18] sm:$0xff] }
   0xf   :  { %v83_v7 = vrot.slane %v62_v4, 1  ;;  %v166_v10 = vrot.slane %v62_v4, 2  ;;  %113 = vmatpush.msra.mxu0 %v67_v1  ;;  %486 = vmatpush.msra.mxu3 %v67_v1  ;;  %v66_v11 = vld [vmem:[%s723_s1 + $0x8] sm:$0xff]  ;;  %v65_v17 = vld [vmem:[%s723_s1] sm:$0xff]  ;;  %v87_v18 = vrot.slane %v64_v13, 1  ;;  %v170_v19 = vrot.slane %v64_v13, 2 }
  0x10   :  { %490 = vmatpush.msra.mxu2 %v69_v9  ;;  %487 = vmatpush.msra.mxu1 %v66_v11  ;;  %v165_v22 = vrot.slane %v61_v3, 2  ;;  %v74_v24 = vld [vmem:[#allocation4 + $0x18] sm:$0x3f]  ;;  %v76_v25 = vld [vmem:[#allocation4 + $0x28] sm:$0x3f]  ;;  %v73_v26 = vld [vmem:[#allocation4 + $0x10] sm:$0xff] }
  0x11   :  { %v84_v14 = vsel %vm81_vm0, %v82_v6, %v83_v7  ;;  %v86_v15 = vsel %vm81_vm0, %v83_v7, %v85_v8  ;;  %149 = vmatpush.msrb.mxu0 %v66_v11  ;;  %v169_v16 = vsel %vm164_vm2, %v166_v10, %v168_v12  ;;  %v88_v20 = vsel %vm81_vm0, %v85_v8, %v87_v18  ;;  %v72_v27 = vld [vmem:[#allocation4 + $0x8] sm:$0x3f]  ;;  %v71_v28 = vld [vmem:[#allocation4] sm:$0xff]  ;;  %v377_v48 = vld [vmem:[#allocation7 + $0x8] sm:$0xf]  ;;  %s579_s12 = smov [#allocation9]  }
  0x12   :  { %453 = vmatmul.msk.f32.vlgmr.msra.gmra.mxu0 %vm89_vm1, %v84_v14  ;;  %454 = vmatmul.msk.f32.vlgmr.msra.gmra.mxu3 %vm89_vm1, %v86_v15  ;;  %v171_v21 = vsel %vm164_vm2, %v168_v12, %v170_v19  ;;  %v167_v23 = vsel %vm164_vm2, %v165_v22, %v166_v10  ;;  %v75_v29 = vld [vmem:[#allocation4 + $0x20] sm:$0xff]  ;;  %v376_v10 = vld [vmem:[#allocation7] sm:$0xff]  ;;  %v367_v15 = vstv %s726_s4  ;;  %vm382_vm5 = vcmask 97280   ;;  %s437_s3 = sshll.u32 %s579_s12, 4  ;;  %s439_s14 = sshll.u32 %s729_s7, 4  ;;  %s438_s3 = int_to_ptr.vmem [resolvable:$true] %s437_s3  ;;  %s440_s14 = int_to_ptr.hbm [resolvable:$true] %s439_s14 }
  0x13   :  { %462 = vmatmul.msk.f32.vlgmr.msra.gmra.mxu2 %vm89_vm1, %v169_v16  ;;  %150 = vmatpush.msrb.mxu0 %v65_v17 }
  0x14   :  { %488 = vmatpush.msra.mxu1 %v65_v17  ;;  %465 = vmatpush.msk.msrb.mxu3 %vm164_vm2, %v74_v24 }
  0x15   :  { %194 = vmatpush.msra.mxu0 %v70_v2  ;;  %458 = vmatmul.msk.f32.vlgmr.msra.gmra.mxu1 %vm89_vm1, %v62_v4 }
  0x16   :  { %475 = vmatpush.msk.msrb.mxu1 %vm164_vm2, %v76_v25  ;;  %261 = vmatpush.msrb.mxu3 %v73_v26 }
  0x17   :  { %195 = vmatpush.msra.mxu0 %v69_v9  ;;  %480 = vmatpush.msk.msrb.mxu2 %vm395_vm3, %v377_v48 }
  0x18   :  { %348 = vmatpush.msrb.mxu1 %v75_v29 }
  0x19   :  { %414 = vmatpush.msrb.mxu2 %v376_v10 }
  0x1a   :  { %455 = vmatmul.msk.f32.gmra.mxu3 %vm89_vm1, %v88_v20  ;;  %457 = vmatmul.msk.f32.vlgmr.msrb.gmra.mxu0 %vm89_vm1, %v61_v3 }
  0x1b   :  { %463 = vmatmul.msk.f32.gmra.mxu2 %vm89_vm1, %v171_v21  ;;  %470 = vmatpush.msk.msrb.mxu0 %vm164_vm2, %v72_v27 }
  0x1d   :  { %459 = vmatmul.msk.f32.gmra.mxu1 %vm89_vm1, %v63_v5  ;;  %301 = vmatpush.msrb.mxu0 %v71_v28 }
  0x22   :  { %456 = vmatmul.msk.f32.gmra.mxu3 %vm89_vm1, %v87_v18  ;;  %461 = vmatmul.msk.f32.vlgmr.msra.gmra.mxu0 %vm89_vm1, %v167_v23 }
  0x23   :  { %464 = vmatmul.msk.f32.gmra.mxu2 %vm89_vm1, %v170_v19 }
  0x25   :  { %460 = vmatmul.msk.f32.gmra.mxu1 %vm89_vm1, %v64_v13 }
  0x8f   :  { %v115_v30 = vpop.f32.mrf.mxu0 }
  0x92   :  { %v155_v31 = vpop.f32.mrf.mxu1 }
  0x95   :  { %v118_v32 = vpop.f32.mrf.mxu3 }
  0x96   :  { %v156_v33 = vadd.f32 %v155_v31, %v118_v32  ;;  %v200_v34 = vpop.f32.mrf.mxu2 }
  0x97   :  { %v152_v35 = vpop.f32.mrf.mxu0 }
  0x98   :  { %v210_v36 = vadd.f32 %v200_v34, %v156_v33  ;;  %v153_v41 = vadd.f32 %v152_v35, %v115_v30 }
  0x9a   :  { %v158_v38 = vpop.f32.mrf.mxu1  ;;  %v216_v39 = vadd.f32 %v214_v37, %v210_v36 }
  0x9c   :  { %v220_v45 = vmax.f32 %v216_v39, 0.0 }
  0x9d   :  { %v121_v40 = vpop.f32.mrf.mxu3 }
  0x9e   :  { %v159_v42 = vadd.f32 %v158_v38, %v121_v40  ;;  %v203_v43 = vpop.f32.mrf.mxu2  ;;  %v228_v51 = vrot.slane %v220_v45, 1  ;;  %v316_v52 = vrot.slane %v220_v45, 2  ;;  %v496_v40 = vld [vmem:[%s728_s6] ss:$0 sm:$0xff] }
  0x9f   :  { %v197_v44 = vpop.f32.mrf.mxu0 }
  0xa0   :  { %v209_v46 = vadd.f32 %v197_v44, %v153_v41  ;;  %v211_v47 = vadd.f32 %v203_v43, %v159_v42 }
  0xa2   :  { %v215_v49 = vadd.f32 %v214_v37, %v209_v46  ;;  %v161_v50 = vpop.f32.mrf.mxu1  ;;  %v217_v54 = vadd.f32 %v214_v37, %v211_v47 }
  0xa4   :  { %v219_v53 = vmax.f32 %v215_v49, 0.0  ;;  %v221_v60 = vmax.f32 %v217_v54, 0.0 }
  0xa5   :  { %v124_v55 = vpop.f32.mrf.mxu3 }
  0xa6   :  { %v227_v56 = vrot.slane %v219_v53, 1  ;;  %v315_v57 = vrot.slane %v219_v53, 2  ;;  %v162_v58 = vadd.f32 %v161_v50, %v124_v55  ;;  %471 = vmatmul.msk.f32.vlgmr.msrb.gmra.mxu0 %vm234_vm4, %v219_v53  ;;  %v206_v59 = vpop.f32.mrf.mxu2  ;;  %v230_v1 = vrot.slane %v221_v60, 1 }
  0xa7   :  { %v318_v2 = vrot.slane %v221_v60, 2 }
  0xa8   :  { %v212_v61 = vadd.f32 %v206_v59, %v162_v58  ;;  %v229_v62 = vsel %vm81_vm0, %v227_v56, %v228_v51  ;;  %v317_v63 = vsel %vm164_vm2, %v315_v57, %v316_v52  ;;  %v231_v4 = vsel %vm81_vm0, %v228_v51, %v230_v1 }
  0xa9   :  { %466 = vmatmul.msk.f32.vlgmr.msrb.gmra.mxu3 %vm234_vm4, %v229_v62  ;;  %476 = vmatmul.msk.f32.vlgmr.msrb.gmra.mxu1 %vm234_vm4, %v317_v63  ;;  %v319_v5 = vsel %vm164_vm2, %v316_v52, %v318_v2 }
  0xaa   :  { %v218_v0 = vadd.f32 %v214_v37, %v212_v61 }
  0xac   :  { %v222_v3 = vmax.f32 %v218_v0, 0.0 }
  0xae   :  { %472 = vmatmul.msk.f32.gmra.mxu0 %vm234_vm4, %v220_v45  ;;  %v232_v6 = vrot.slane %v222_v3, 1  ;;  %v320_v7 = vrot.slane %v222_v3, 2 }
  0xb0   :  { %v233_v8 = vsel %vm81_vm0, %v230_v1, %v232_v6  ;;  %v321_v9 = vsel %vm164_vm2, %v318_v2, %v320_v7 }
  0xb1   :  { %467 = vmatmul.msk.f32.gmra.mxu3 %vm234_vm4, %v231_v4  ;;  %477 = vmatmul.msk.f32.gmra.mxu1 %vm234_vm4, %v319_v5 }
  0xb6   :  { %473 = vmatmul.msk.f32.gmra.mxu0 %vm234_vm4, %v221_v60 }
  0xb9   :  { %468 = vmatmul.msk.f32.gmra.mxu3 %vm234_vm4, %v233_v8  ;;  %478 = vmatmul.msk.f32.gmra.mxu1 %vm234_vm4, %v321_v9 }
  0xbe   :  { %474 = vmatmul.msk.f32.gmra.mxu0 %vm234_vm4, %v222_v3 }
  0xc1   :  { %469 = vmatmul.msk.f32.gmra.mxu3 %vm234_vm4, %v232_v6  ;;  %479 = vmatmul.msk.f32.gmra.mxu1 %vm234_vm4, %v320_v7 }
 0x123   :  { %v303_v11 = vpop.f32.mrf.mxu0 }
 0x126   :  { %v350_v12 = vpop.f32.mrf.mxu1 }
 0x12b   :  { %v306_v17 = vpop.f32.mrf.mxu0 }
 0x12c   :  { %v263_v13 = vpop.f32.mrf.mxu3 }
 0x12d   :  { %v304_v14 = vadd.f32 %v303_v11, %v263_v13 }
 0x12e   :  { %v353_v19 = vpop.f32.mrf.mxu1 }
 0x12f   :  { %v362_v16 = vadd.f32 %v350_v12, %v304_v14 }
 0x131   :  { %v368_v18 = vadd.f32 %v367_v15, %v362_v16 }
 0x133   :  { %v372_v20 = vmax.f32 %v368_v18, 0.0  ;;  %v309_v25 = vpop.f32.mrf.mxu0 }
 0x134   :  { %v266_v21 = vpop.f32.mrf.mxu3 }
 0x135   :  { %v307_v22 = vadd.f32 %v306_v17, %v266_v21  ;;  %481 = vmatmul.msk.f32.vlgmr.msrb.gmra.mxu2 %vm382_vm5, %v372_v20 }
 0x136   :  { %v356_v27 = vpop.f32.mrf.mxu1 }
 0x137   :  { %v363_v23 = vadd.f32 %v353_v19, %v307_v22 }
 0x139   :  { %v369_v24 = vadd.f32 %v367_v15, %v363_v23 }
 0x13b   :  { %v373_v26 = vmax.f32 %v369_v24, 0.0  ;;  %v312_v33 = vpop.f32.mrf.mxu0 }
 0x13c   :  { %v269_v28 = vpop.f32.mrf.mxu3 }
 0x13d   :  { %v310_v29 = vadd.f32 %v309_v25, %v269_v28  ;;  %482 = vmatmul.msk.f32.gmra.mxu2 %vm382_vm5, %v373_v26 }
 0x13e   :  { %v359_v36 = vpop.f32.mrf.mxu1 }
 0x13f   :  { %v364_v30 = vadd.f32 %v356_v27, %v310_v29 }
 0x141   :  { %v370_v31 = vadd.f32 %v367_v15, %v364_v30 }
 0x143   :  { %v374_v32 = vmax.f32 %v370_v31, 0.0 }
 0x144   :  { %v272_v34 = vpop.f32.mrf.mxu3 }
 0x145   :  { %v313_v35 = vadd.f32 %v312_v33, %v272_v34  ;;  %483 = vmatmul.msk.f32.gmra.mxu2 %vm382_vm5, %v374_v32 }
 0x147   :  { %v365_v37 = vadd.f32 %v359_v36, %v313_v35 }
 0x149   :  { %v371_v38 = vadd.f32 %v367_v15, %v365_v37 }
 0x14b   :  { %v375_v39 = vmax.f32 %v371_v38, 0.0 }
 0x14d   :  { %484 = vmatmul.msk.f32.gmra.mxu2 %vm382_vm5, %v375_v39 }
 0x1b8   :  { %v416_v41 = vpop.f32.mrf.mxu2 }
 0x1b9   :  { %v417_v42 = vadd.f32 %v496_v40, %v416_v41 }
 0x1bb   :  { %429 = vst [vmem:[#allocation9] sm:$0xff] %v417_v42 }
 0x1c0   :  { %v419_v43 = vpop.f32.mrf.mxu2 }
 0x1c1   :  { %v420_v44 = vadd.f32 %v496_v40, %v419_v43 }
 0x1c3   :  { %430 = vst [vmem:[#allocation9 + $0x8] sm:$0xff] %v420_v44 }
 0x1c8   :  { %v422_v45 = vpop.f32.mrf.mxu2 }
 0x1c9   :  { %v423_v46 = vadd.f32 %v496_v40, %v422_v45 }
 0x1cb   :  { %431 = vst [vmem:[#allocation9 + $0x10] sm:$0xff] %v423_v46 }
 0x1d0   :  { %v425_v47 = vpop.f32.mrf.mxu2 }
 0x1d1   :  { %v426_v48 = vadd.f32 %v496_v40, %v425_v47 }
 0x1d3   :  { %v428_v49 = vsel %vm395_vm3, %v426_v48, 0.0 }
 0x1d4   :  { %432 = vst [vmem:[#allocation9 + $0x18] sm:$0xff] %v428_v49 }
 0x1d5   :  { %445 = dma.vmem_to_hbm [thread:$0]  %s438_s3, 512, %s440_s14, [#allocation6], %s576_s9, %s576_s9, %s577_s10  }
 0x1d6   :  { %573 = dma.done.wait [#allocation6], 512  }
 0x1d7   :  { %574 = vsyncadd [#allocation6], 4294966784 }
 0x1d8   :  { %450 = vsyncpa [#allocation5], 1 }
 0x1d9   :  { %451 = vsyncpa [#allocation8], 1 }
 0x1da   :  { %452 = vsyncpa [#allocation6], 1 }

</bundles_post_ra>
